<compile_context>
chip_gen: v5e
topology: v5e:2x2
jax: 0.10.0
libtpu: 0.0.40
codegen_flags: <defaults>
</compile_context>

<pallas_src>
import jax
import jax.numpy as jnp
from jax.experimental import pallas as pl
from jax.experimental.pallas import tpu as pltpu


def _round_up(v, m):
    return ((v + m - 1) // m) * m


def _sublane_multiple(dtype):
    # Sublane packing of the vreg: f32 -> 8, bf16 -> 16, int8/fp8 -> 32.
    return max(8, 32 // jnp.dtype(dtype).itemsize)


# ---------------------------------------------------------------------------
# Kernels
# ---------------------------------------------------------------------------

def _lora_kernel_f32(x_ref, w_ref, inter_ref, la_ref, bias_ref, o_ref):
    """float32 output: accumulate the base matmul directly into the resident
    (k-invariant) output block; bias + LoRA up-projection folded into k == 0."""
    k = pl.program_id(2)

    @pl.when(k == 0)
    def _init():
        # bias (1, tn) + LoRA up-projection: inter (tm, Rp) . A_T (Rp, tn).
        o_ref[...] = bias_ref[...] + jnp.dot(
            inter_ref[...], la_ref[...], preferred_element_type=jnp.float32)

    # Base linear partial product: x (tm, tk) . W_T (tk, tn) -> (tm, tn).
    o_ref[...] += jnp.dot(x_ref[...], w_ref[...],
                          preferred_element_type=jnp.float32)


def _lora_kernel_acc(x_ref, w_ref, inter_ref, la_ref, bias_ref, o_ref, acc_ref):
    """Generic-dtype output (e.g. bf16): f32 scratch accumulator across K,
    cast + store only on the last K step."""
    k = pl.program_id(2)

    @pl.when(k == 0)
    def _init():
        acc_ref[...] = bias_ref[...].astype(jnp.float32) + jnp.dot(
            inter_ref[...], la_ref[...], preferred_element_type=jnp.float32)

    acc_ref[...] += jnp.dot(x_ref[...], w_ref[...],
                            preferred_element_type=jnp.float32)

    @pl.when(k == pl.num_programs(2) - 1)
    def _finalize():
        o_ref[...] = acc_ref[...].astype(o_ref.dtype)


# ---------------------------------------------------------------------------
# Parameter prep (one-time, module-construction analogue) + forward
# ---------------------------------------------------------------------------

def lora_prepare(weight, bias, lora_A, lora_B):
    """One-time parameter preparation (NOT per forward call): transpose to
    MXU-native layouts and zero-pad rank to a full 128-lane width."""
    out_features, in_features = weight.shape
    rank = lora_A.shape[1]
    rp = _round_up(rank, 128)
    w_t = jnp.asarray(weight).T                                       # (K, N)
    lb_t = jnp.pad(jnp.asarray(lora_B).T, ((0, 0), (0, rp - rank)))   # (K, Rp)
    la_t = jnp.pad(jnp.asarray(lora_A).T, ((0, rp - rank), (0, 0)))   # (Rp, N)
    bias2d = jnp.asarray(bias).reshape(1, out_features)               # (1, N)
    return {"w_t": w_t, "lb_t": lb_t, "la_t": la_t, "bias2d": bias2d,
            "rank": rank}


def lora_forward(x, params, alpha, *, tm=256, tn=512, tk=1024,
                 vmem_limit_bytes=None):
    """LoRA forward: Linear(x) + ((x @ lora_B.T) @ lora_A.T) * (alpha / rank)."""
    w_t, lb_t, la_t, bias2d = (params["w_t"], params["lb_t"],
                               params["la_t"], params["bias2d"])
    rank = params["rank"]

    batch, seq, in_features = x.shape
    out_features = w_t.shape[1]
    rp = la_t.shape[0]
    scaling = float(alpha) / float(rank)

    M = batch * seq
    dtype = x.dtype
    itemsize = jnp.dtype(dtype).itemsize

    # Effective tile sizes: clamp to the (padded) problem, keep HW alignment.
    sub = _sublane_multiple(dtype)
    tm = max(sub, min(tm, _round_up(M, sub)))
    tn = min(tn, _round_up(out_features, 128))
    tk = min(tk, _round_up(in_features, 128))

    # v7x megacore: if the parallel (i, j) grid would be a single tile, split
    # the output-column axis so both TensorCores get work.
    if pl.cdiv(M, tm) == 1 and pl.cdiv(out_features, tn) == 1:
        half = _round_up(out_features, 128) // 2
        if half >= 128:
            tn = _round_up(half, 128)

    Mp = _round_up(M, tm)
    Np = _round_up(out_features, tn)
    Kp = _round_up(in_features, tk)

    x2d = x.reshape(M, in_features)

    # LoRA down-projection hoisted out of the grid sweep: one small matmul,
    # scaling applied on the f32 intermediate.
    inter = (jnp.dot(x2d, lb_t, preferred_element_type=jnp.float32)
             * scaling).astype(dtype)                             # (M, Rp)

    if (Mp, Kp) != (M, in_features):
        x2d = jnp.pad(x2d, ((0, Mp - M), (0, Kp - in_features)))
    if Mp != M:
        inter = jnp.pad(inter, ((0, Mp - M), (0, 0)))

    w_p = w_t
    if (Kp, Np) != w_t.shape:
        w_p = jnp.pad(w_t, ((0, Kp - in_features), (0, Np - out_features)))
    la_p = la_t
    if Np != out_features:
        la_p = jnp.pad(la_t, ((0, 0), (0, Np - out_features)))
    b_p = bias2d
    if Np != out_features:
        b_p = jnp.pad(bias2d, ((0, 0), (0, Np - out_features)))

    # Keep the MXU operands in the activation dtype (no-op when already equal).
    if w_p.dtype != dtype:
        w_p = w_p.astype(dtype)
    if la_p.dtype != dtype:
        la_p = la_p.astype(dtype)

    grid = (Mp // tm, Np // tn, Kp // tk)
    grid_m, grid_n, grid_k = grid

    use_direct_f32 = jnp.dtype(dtype) == jnp.dtype(jnp.float32)
    if use_direct_f32:
        kernel = _lora_kernel_f32
        scratch_shapes = []
    else:
        kernel = _lora_kernel_acc
        scratch_shapes = [pltpu.VMEM((tm, tn), jnp.float32)]

    cost = pl.CostEstimate(
        flops=int(2 * M * in_features * out_features      # base matmul
                  + 2 * M * rp * out_features),           # LoRA up-projection
        transcendentals=0,
        bytes_accessed=int(itemsize * (
            grid_n * Mp * Kp                               # x re-streamed per j
            + grid_m * Kp * Np                             # weight re-streamed per i
            + Mp * rp                                      # intermediate
            + grid_m * rp * Np                             # lora_A per i
            + grid_m * Np                                  # bias per i
            + Mp * Np)),                                   # output writeback
    )

    # Rough VMEM budget (double-buffered in/out tiles + scratch); raise the
    # scoped limit only if we would exceed the 32 MiB default.
    vmem_bytes = 2 * itemsize * (tm * tk + tk * tn + tm * rp + rp * tn + tn
                                 + tm * tn)
    if not use_direct_f32:
        vmem_bytes += 4 * tm * tn
    if vmem_limit_bytes is None and vmem_bytes > (30 << 20):
        vmem_limit_bytes = min(vmem_bytes + (8 << 20), 128 << 20)

    out_p = pl.pallas_call(
        kernel,
        out_shape=jax.ShapeDtypeStruct((Mp, Np), dtype),
        grid_spec=pltpu.PrefetchScalarGridSpec(
            num_scalar_prefetch=0,
            grid=grid,
            in_specs=[
                pl.BlockSpec((tm, tk), lambda i, j, k: (i, k)),   # x
                pl.BlockSpec((tk, tn), lambda i, j, k: (k, j)),   # W.T  (K, N)
                pl.BlockSpec((tm, rp), lambda i, j, k: (i, 0)),   # x@B.T (M, Rp)
                pl.BlockSpec((rp, tn), lambda i, j, k: (0, j)),   # A.T  (Rp, N)
                pl.BlockSpec((1, tn), lambda i, j, k: (0, j)),    # bias (1, N)
            ],
            out_specs=pl.BlockSpec((tm, tn), lambda i, j, k: (i, j)),
            scratch_shapes=scratch_shapes,
        ),
        compiler_params=pltpu.CompilerParams(
            dimension_semantics=("parallel", "parallel", "arbitrary"),
            vmem_limit_bytes=vmem_limit_bytes),
        cost_estimate=cost,
    )(x2d, w_p, inter, la_p, b_p)

    return out_p[:M, :out_features].reshape(batch, seq, out_features)


# ---------------------------------------------------------------------------
# Pure-JAX reference + checks
# ---------------------------------------------------------------------------

def _ref_lora(x, weight, bias, lora_A, lora_B, alpha):
    scaling = alpha / lora_A.shape[1]
    base = jnp.einsum("bsk,nk->bsn", x, weight) + bias
    x2d = x.reshape(-1, x.shape[-1])
    adj = ((x2d @ lora_B.T) @ lora_A.T) * scaling
    return base + adj.reshape(x.shape[0], x.shape[1], -1)


if __name__ == "__main__":
    # --- Small demo shapes consistent with the module's forward. ---
    batch, seq = 2, 8
    in_features, out_features = 32, 32
    rank, alpha = 4, 1

    key = jax.random.PRNGKey(0)
    kx, kw, kb, ka, klb = jax.random.split(key, 5)

    x = jax.random.normal(kx, (batch, seq, in_features), jnp.float32)
    weight = jax.random.normal(kw, (out_features, in_features), jnp.float32) * 0.02
    bias = jax.random.normal(kb, (out_features,), jnp.float32) * 0.01
    lora_A = jax.random.normal(ka, (out_features, rank), jnp.float32) * 0.01
    lora_B = jax.random.normal(klb, (rank, in_features), jnp.float32) * 0.01

    params = lora_prepare(weight, bias, lora_A, lora_B)   # parameter-prep time
    out = jax.block_until_ready(lora_forward(x, params, alpha))
    ref = _ref_lora(x, weight, bias, lora_A, lora_B, alpha)
    assert out.shape == (batch, seq, out_features)
    assert jnp.allclose(out, ref, atol=1e-4, rtol=1e-4), \
        float(jnp.max(jnp.abs(out - ref)))

    # --- Second check: exercises M/N/K tiling, padding and the K-reduction
    #     accumulate-into-output path (small tiles -> grid (3, 2, 3)). ---
    b2, s2, k2, n2 = 2, 80, 320, 192
    k2x, k2w, k2b, k2a, k2lb = jax.random.split(jax.random.PRNGKey(1), 5)
    x2 = jax.random.normal(k2x, (b2, s2, k2), jnp.float32)
    w2 = jax.random.normal(k2w, (n2, k2), jnp.float32) * 0.02
    bias2 = jax.random.normal(k2b, (n2,), jnp.float32) * 0.01
    la2 = jax.random.normal(k2a, (n2, rank), jnp.float32) * 0.01
    lb2 = jax.random.normal(k2lb, (rank, k2), jnp.float32) * 0.01

    params2 = lora_prepare(w2, bias2, la2, lb2)
    out2 = jax.block_until_ready(
        lora_forward(x2, params2, alpha, tm=64, tn=128, tk=128))
    ref2 = _ref_lora(x2, w2, bias2, la2, lb2, alpha)
    assert jnp.allclose(out2, ref2, atol=1e-3, rtol=1e-3), \
        float(jnp.max(jnp.abs(out2 - ref2)))

    # --- Third check: bf16 inputs -> exercises the f32-scratch kernel variant
    #     and the 16-sublane tm alignment. ---
    xb = x2.astype(jnp.bfloat16)
    params3 = lora_prepare(w2.astype(jnp.bfloat16), bias2.astype(jnp.bfloat16),
                           la2.astype(jnp.bfloat16), lb2.astype(jnp.bfloat16))
    out3 = jax.block_until_ready(
        lora_forward(xb, params3, alpha, tm=64, tn=128, tk=128))
    ref3 = _ref_lora(xb.astype(jnp.float32),
                     w2.astype(jnp.bfloat16).astype(jnp.float32),
                     bias2.astype(jnp.bfloat16).astype(jnp.float32),
                     la2.astype(jnp.bfloat16).astype(jnp.float32),
                     lb2.astype(jnp.bfloat16).astype(jnp.float32), alpha)
    assert jnp.allclose(out3.astype(jnp.float32), ref3, atol=2e-2, rtol=2e-2), \
        float(jnp.max(jnp.abs(out3.astype(jnp.float32) - ref3)))

    print("KERNEL_OK")
</pallas_src>

<mosaic_0001>
module attributes {stable_mosaic.version = 11 : i64} {
  func.func @_lora_kernel_f32(%arg0: i32, %arg1: i32, %arg2: i32, %arg3: memref<16x128xf32, #tpu.memory_space<vmem>>, %arg4: memref<128x128xf32, #tpu.memory_space<vmem>>, %arg5: memref<16x128xf32, #tpu.memory_space<vmem>>, %arg6: memref<128x128xf32, #tpu.memory_space<vmem>>, %arg7: memref<1x128xf32, #tpu.memory_space<vmem>>, %arg8: memref<16x128xf32, #tpu.memory_space<vmem>>) attributes {dimension_semantics = [#tpu.dimension_semantics<parallel>, #tpu.dimension_semantics<parallel>, #tpu.dimension_semantics<arbitrary>], iteration_bounds = array<i64: 1, 1, 1>, scalar_prefetch = 0 : i64, scratch_operands = 0 : i64, tpu.core_type = #tpu.core_type<tc>, window_params = [{transform_indices = @transform_0, window_bounds = array<i64: 16, 128>}, {transform_indices = @transform_1, window_bounds = array<i64: 128, 128>}, {transform_indices = @transform_2, window_bounds = array<i64: 16, 128>}, {transform_indices = @transform_3, window_bounds = array<i64: 128, 128>}, {transform_indices = @transform_4, window_bounds = array<i64: 1, 128>}, {transform_indices = @transform_5, window_bounds = array<i64: 16, 128>}]} {
    %c0_i32 = arith.constant 0 : i32
    %0 = arith.cmpi eq, %arg2, %c0_i32 : i32
    %1 = arith.extui %0 : i1 to i32
    %c0_i32_0 = arith.constant 0 : i32
    %2 = arith.cmpi ne, %1, %c0_i32_0 : i32
    scf.if %2 {
      %c0_8 = arith.constant 0 : index
      %c0_9 = arith.constant 0 : index
      %9 = vector.load %arg7[%c0_8, %c0_9] : memref<1x128xf32, #tpu.memory_space<vmem>>, vector<1x128xf32>
      %c0_10 = arith.constant 0 : index
      %c0_11 = arith.constant 0 : index
      %10 = vector.load %arg5[%c0_10, %c0_11] : memref<16x128xf32, #tpu.memory_space<vmem>>, vector<16x128xf32>
      %c0_12 = arith.constant 0 : index
      %c0_13 = arith.constant 0 : index
      %11 = vector.load %arg6[%c0_12, %c0_13] : memref<128x128xf32, #tpu.memory_space<vmem>>, vector<128x128xf32>
      %cst_14 = arith.constant dense<0.000000e+00> : vector<16x128xf32>
      %12 = tpu.matmul %10, %11, %cst_14 {dimension_numbers = #tpu.dot_dimension_numbers<[1], [0], [0], [1], [0, 0, 1, 1], [], []>} : vector<16x128xf32>, vector<128x128xf32>, vector<16x128xf32> -> vector<16x128xf32>
      %13 = vector.broadcast %9 : vector<1x128xf32> to vector<16x128xf32>
      %14 = arith.addf %13, %12 : vector<16x128xf32>
      %c0_15 = arith.constant 0 : index
      %c0_16 = arith.constant 0 : index
      %15 = vector.load %arg8[%c0_15, %c0_16] : memref<16x128xf32, #tpu.memory_space<vmem>>, vector<16x128xf32>
      tpu.vector_store %arg8[%c0_15, %c0_16], %14 {strides = array<i32>} : memref<16x128xf32, #tpu.memory_space<vmem>>, vector<16x128xf32>,
    } else {
    }
    %c0 = arith.constant 0 : index
    %c0_1 = arith.constant 0 : index
    %3 = vector.load %arg8[%c0, %c0_1] : memref<16x128xf32, #tpu.memory_space<vmem>>, vector<16x128xf32>
    %c0_2 = arith.constant 0 : index
    %c0_3 = arith.constant 0 : index
    %4 = vector.load %arg3[%c0_2, %c0_3] : memref<16x128xf32, #tpu.memory_space<vmem>>, vector<16x128xf32>
    %c0_4 = arith.constant 0 : index
    %c0_5 = arith.constant 0 : index
    %5 = vector.load %arg4[%c0_4, %c0_5] : memref<128x128xf32, #tpu.memory_space<vmem>>, vector<128x128xf32>
    %cst = arith.constant dense<0.000000e+00> : vector<16x128xf32>
    %6 = tpu.matmul %4, %5, %cst {dimension_numbers = #tpu.dot_dimension_numbers<[1], [0], [0], [1], [0, 0, 1, 1], [], []>} : vector<16x128xf32>, vector<128x128xf32>, vector<16x128xf32> -> vector<16x128xf32>
    %7 = arith.addf %3, %6 : vector<16x128xf32>
    %c0_6 = arith.constant 0 : index
    %c0_7 = arith.constant 0 : index
    %8 = vector.load %arg8[%c0_6, %c0_7] : memref<16x128xf32, #tpu.memory_space<vmem>>, vector<16x128xf32>
    tpu.vector_store %arg8[%c0_6, %c0_7], %7 {strides = array<i32>} : memref<16x128xf32, #tpu.memory_space<vmem>>, vector<16x128xf32>,
    return
  }
  func.func @transform_0(%arg0: i32, %arg1: i32, %arg2: i32) -> (i32, i32) {
    %c0_i32 = arith.constant 0 : i32
    return %arg0, %arg2 : i32, i32
  }
  func.func @transform_1(%arg0: i32, %arg1: i32, %arg2: i32) -> (i32, i32) {
    %c0_i32 = arith.constant 0 : i32
    return %arg2, %arg1 : i32, i32
  }
  func.func @transform_2(%arg0: i32, %arg1: i32, %arg2: i32) -> (i32, i32) {
    %c0_i32 = arith.constant 0 : i32
    %c0_i32_0 = arith.constant 0 : i32
    return %arg0, %c0_i32 : i32, i32
  }
  func.func @transform_3(%arg0: i32, %arg1: i32, %arg2: i32) -> (i32, i32) {
    %c0_i32 = arith.constant 0 : i32
    %c0_i32_0 = arith.constant 0 : i32
    return %c0_i32, %arg1 : i32, i32
  }
  func.func @transform_4(%arg0: i32, %arg1: i32, %arg2: i32) -> (i32, i32) {
    %c0_i32 = arith.constant 0 : i32
    %c0_i32_0 = arith.constant 0 : i32
    return %c0_i32, %arg1 : i32, i32
  }
  func.func @transform_5(%arg0: i32, %arg1: i32, %arg2: i32) -> (i32, i32) {
    %c0_i32 = arith.constant 0 : i32
    return %arg0, %arg1 : i32, i32
  }
}

</mosaic_0001>

<bundles_post_ra>
// kernel: tpu_custom_call.1
= control target key start
LH: loop header
LB: loop body
LE: loop exit
PB: predicated region body
PF: predicated region fallthrough
CT: control target
= control target key end

     0   :  { %10 = vsyncpa [#allocation3], 0  ;;  %s443_s0 = inlined_call_operand.hbm [shape: f32[16,128], index: 0, kind: input, shape index: {}]   ;;  %s444_s1 = inlined_call_operand.hbm [shape: f32[128,128], index: 1, kind: input, shape index: {}]   ;;  %s445_s2 = inlined_call_operand.hbm [shape: f32[16,128], index: 2, kind: input, shape index: {}]   ;;  %s446_s3 = inlined_call_operand.hbm [shape: f32[128,128], index: 3, kind: input, shape index: {}]   ;;  %s447_s4 = inlined_call_operand.vmem [shape: f32[1,128], index: 4, kind: input, shape index: {}]   ;;  %s448_s5 = inlined_call_operand.hbm [shape: f32[16,128], index: 5, kind: output, shape index: {}]  }
   0x1   :  { %11 = vsyncpa [#allocation6], 0 }
   0x2   :  { %12 = vsyncpa [#allocation9], 0 }
   0x3   :  { %13 = vsyncpa [#allocation4], 0  ;;  %s31_s20 = sshll.u32 %s444_s1, 4  ;;  %s373_s21 = smov [#allocation5]   ;;  %s32_s20 = int_to_ptr.hbm [resolvable:$true] %s31_s20 }
   0x4   :  { %s33_s22 = sshll.u32 %s373_s21, 4  ;;  %s18_s25 = sshll.u32 %s443_s0, 4  ;;  %s34_s22 = int_to_ptr.vmem [resolvable:$true] %s33_s22  ;;  %s19_s25 = int_to_ptr.hbm [resolvable:$true] %s18_s25 }
   0x5   :  { %s374_s26 = smov 128   ;;  %s375_s27 = smov 8  }
   0x6   :  { %39 = dma.hbm_to_vmem [thread:$0]  %s32_s20, 2048, %s34_s22, [#allocation6], %s374_s26, %s374_s26, %s375_s27  }
   0x7   :  { %s376_s28 = smov [#allocation2]   ;;  %s44_s1 = sshll.u32 %s445_s2, 4  ;;  %s45_s1 = int_to_ptr.hbm [resolvable:$true] %s44_s1 }
   0x8   :  { %s20_s29 = sshll.u32 %s376_s28, 4  ;;  %s57_s8 = sshll.u32 %s446_s3, 4  ;;  %s21_s29 = int_to_ptr.vmem [resolvable:$true] %s20_s29  ;;  %s58_s8 = int_to_ptr.hbm [resolvable:$true] %s57_s8 }
   0x9   :  { %26 = dma.hbm_to_vmem [thread:$0]  %s19_s25, 256, %s21_s29, [#allocation3], %s374_s26, %s374_s26, %s375_s27  }
   0xa   :  { %s377_s9 = smov [#allocation7]   ;;  %s378_s11 = smov [#allocation8]  }
   0xb   :  { %s46_s10 = sshll.u32 %s377_s9, 4  ;;  %s59_s2 = sshll.u32 %s378_s11, 4  ;;  %s47_s10 = int_to_ptr.vmem [resolvable:$true] %s46_s10  ;;  %s60_s2 = int_to_ptr.vmem [resolvable:$true] %s59_s2 }
   0xc   :  { %52 = dma.hbm_to_vmem [thread:$0]  %s45_s1, 256, %s47_s10, [#allocation6], %s374_s26, %s374_s26, %s375_s27  }
   0xd   :  { %65 = dma.hbm_to_vmem [thread:$0]  %s58_s8, 2048, %s60_s2, [#allocation9], %s374_s26, %s374_s26, %s375_s27  }
   0xe   :  { %365 = dma.done.wait [#allocation3], 256  }
   0xf   :  { %366 = vsyncadd [#allocation3], 4294967040 }
  0x10   :  { %367 = dma.done.wait [#allocation6], 2304  }
  0x11   :  { %368 = vsyncadd [#allocation6], 4294964992 }
  0x12   :  { %369 = dma.done.wait [#allocation9], 2048  }
  0x13   :  { %370 = vsyncadd [#allocation9], 4294965248  ;;  %v106_v0 = vld [vmem:[#allocation8 + $0x78] sm:$0xff]  ;;  %v105_v1 = vld [vmem:[#allocation8 + $0x70] sm:$0xff]  ;;  %s379_s13 = smov [#allocation10]   ;;  %s190_s17 = sshll.u32 %s448_s5, 4  ;;  %s191_s17 = int_to_ptr.hbm [resolvable:$true] %s190_s17 }
  0x14   :  { %205 = vmatpush.msra.mxu2 %v106_v0  ;;  %107 = vmatpush.msra.mxu0 %v106_v0  ;;  %v104_v2 = vld [vmem:[#allocation8 + $0x68] sm:$0xff]  ;;  %v155_v4 = vld [vmem:[#allocation5 + $0x70] sm:$0xff]  ;;  %v154_v6 = vld [vmem:[#allocation5 + $0x68] sm:$0xff]  ;;  %s188_s14 = sshll.u32 %s379_s13, 4  ;;  %s189_s14 = int_to_ptr.vmem [resolvable:$true] %s188_s14 }
  0x15   :  { %v156_v3 = vld [vmem:[#allocation5 + $0x78] sm:$0xff]  ;;  %v103_v5 = vld [vmem:[#allocation8 + $0x60] sm:$0xff]  ;;  %v102_v7 = vld [vmem:[#allocation8 + $0x58] sm:$0xff] }
  0x16   :  { %206 = vmatpush.msra.mxu2 %v105_v1  ;;  %108 = vmatpush.msra.mxu0 %v105_v1  ;;  %v153_v8 = vld [vmem:[#allocation5 + $0x60] sm:$0xff]  ;;  %v152_v10 = vld [vmem:[#allocation5 + $0x58] sm:$0xff]  ;;  %v151_v12 = vld [vmem:[#allocation5 + $0x50] sm:$0xff] }
  0x17   :  { %221 = vmatpush.msra.mxu3 %v156_v3  ;;  %157 = vmatpush.msra.mxu1 %v156_v3  ;;  %v101_v9 = vld [vmem:[#allocation8 + $0x50] sm:$0xff]  ;;  %v100_v11 = vld [vmem:[#allocation8 + $0x48] sm:$0xff]  ;;  %v99_v13 = vld [vmem:[#allocation8 + $0x40] sm:$0xff] }
  0x18   :  { %207 = vmatpush.msra.mxu2 %v104_v2  ;;  %109 = vmatpush.msra.mxu0 %v104_v2  ;;  %v150_v14 = vld [vmem:[#allocation5 + $0x48] sm:$0xff]  ;;  %v149_v16 = vld [vmem:[#allocation5 + $0x40] sm:$0xff]  ;;  %v148_v18 = vld [vmem:[#allocation5 + $0x38] sm:$0xff] }
  0x19   :  { %222 = vmatpush.msra.mxu3 %v155_v4  ;;  %158 = vmatpush.msra.mxu1 %v155_v4  ;;  %v98_v15 = vld [vmem:[#allocation8 + $0x38] sm:$0xff]  ;;  %v97_v17 = vld [vmem:[#allocation8 + $0x30] sm:$0xff]  ;;  %v96_v19 = vld [vmem:[#allocation8 + $0x28] sm:$0xff] }
  0x1a   :  { %208 = vmatpush.msra.mxu2 %v103_v5  ;;  %110 = vmatpush.msra.mxu0 %v103_v5  ;;  %v147_v20 = vld [vmem:[#allocation5 + $0x30] sm:$0xff]  ;;  %v146_v22 = vld [vmem:[#allocation5 + $0x28] sm:$0xff]  ;;  %v145_v24 = vld [vmem:[#allocation5 + $0x20] sm:$0xff] }
  0x1b   :  { %223 = vmatpush.msra.mxu3 %v154_v6  ;;  %159 = vmatpush.msra.mxu1 %v154_v6  ;;  %v95_v21 = vld [vmem:[#allocation8 + $0x20] sm:$0xff]  ;;  %v94_v23 = vld [vmem:[#allocation8 + $0x18] sm:$0xff]  ;;  %v93_v25 = vld [vmem:[#allocation8 + $0x10] sm:$0xff] }
  0x1c   :  { %209 = vmatpush.msra.mxu2 %v102_v7  ;;  %111 = vmatpush.msra.mxu0 %v102_v7  ;;  %v144_v26 = vld [vmem:[#allocation5 + $0x18] sm:$0xff]  ;;  %v143_v28 = vld [vmem:[#allocation5 + $0x10] sm:$0xff]  ;;  %v90_v30 = vld [vmem:[#allocation7 + $0x8] sm:$0xff] }
  0x1d   :  { %224 = vmatpush.msra.mxu3 %v153_v8  ;;  %160 = vmatpush.msra.mxu1 %v153_v8  ;;  %v92_v27 = vld [vmem:[#allocation8 + $0x8] sm:$0xff]  ;;  %v91_v29 = vld [vmem:[#allocation8] sm:$0xff]  ;;  %v89_v31 = vld [vmem:[#allocation7] sm:$0xff] }
  0x1e   :  { %210 = vmatpush.msra.mxu2 %v101_v9  ;;  %112 = vmatpush.msra.mxu0 %v101_v9  ;;  %v142_v32 = vld [vmem:[#allocation5 + $0x8] sm:$0xff]  ;;  %v141_v33 = vld [vmem:[#allocation5] sm:$0xff]  ;;  %v140_v34 = vld [vmem:[#allocation2 + $0x8] sm:$0xff] }
  0x1f   :  { %225 = vmatpush.msra.mxu3 %v152_v10  ;;  %161 = vmatpush.msra.mxu1 %v152_v10  ;;  %v139_v35 = vld [vmem:[#allocation2] sm:$0xff] }
  0x20   :  { %211 = vmatpush.msra.mxu2 %v100_v11  ;;  %113 = vmatpush.msra.mxu0 %v100_v11  ;;  %v244_v36 = vld [vmem:[%s447_s4] ss:$0 sm:$0xff] }
  0x21   :  { %226 = vmatpush.msra.mxu3 %v151_v12  ;;  %162 = vmatpush.msra.mxu1 %v151_v12 }
  0x22   :  { %212 = vmatpush.msra.mxu2 %v99_v13  ;;  %114 = vmatpush.msra.mxu0 %v99_v13 }
  0x23   :  { %227 = vmatpush.msra.mxu3 %v150_v14  ;;  %163 = vmatpush.msra.mxu1 %v150_v14 }
  0x24   :  { %213 = vmatpush.msra.mxu2 %v98_v15  ;;  %115 = vmatpush.msra.mxu0 %v98_v15 }
  0x25   :  { %228 = vmatpush.msra.mxu3 %v149_v16  ;;  %164 = vmatpush.msra.mxu1 %v149_v16 }
  0x26   :  { %214 = vmatpush.msra.mxu2 %v97_v17  ;;  %116 = vmatpush.msra.mxu0 %v97_v17 }
  0x27   :  { %229 = vmatpush.msra.mxu3 %v148_v18  ;;  %165 = vmatpush.msra.mxu1 %v148_v18 }
  0x28   :  { %215 = vmatpush.msra.mxu2 %v96_v19  ;;  %117 = vmatpush.msra.mxu0 %v96_v19 }
  0x29   :  { %230 = vmatpush.msra.mxu3 %v147_v20  ;;  %166 = vmatpush.msra.mxu1 %v147_v20 }
  0x2a   :  { %216 = vmatpush.msra.mxu2 %v95_v21  ;;  %118 = vmatpush.msra.mxu0 %v95_v21 }
  0x2b   :  { %231 = vmatpush.msra.mxu3 %v146_v22  ;;  %167 = vmatpush.msra.mxu1 %v146_v22 }
  0x2c   :  { %217 = vmatpush.msra.mxu2 %v94_v23  ;;  %119 = vmatpush.msra.mxu0 %v94_v23 }
  0x2d   :  { %232 = vmatpush.msra.mxu3 %v145_v24  ;;  %168 = vmatpush.msra.mxu1 %v145_v24 }
  0x2e   :  { %218 = vmatpush.msra.mxu2 %v93_v25  ;;  %120 = vmatpush.msra.mxu0 %v93_v25 }
  0x2f   :  { %233 = vmatpush.msra.mxu3 %v144_v26  ;;  %169 = vmatpush.msra.mxu1 %v144_v26 }
  0x30   :  { %219 = vmatpush.msra.mxu2 %v92_v27  ;;  %121 = vmatpush.msra.mxu0 %v92_v27 }
  0x31   :  { %234 = vmatpush.msra.mxu3 %v143_v28  ;;  %170 = vmatpush.msra.mxu1 %v143_v28 }
  0x32   :  { %220 = vmatpush.msra.mxu2 %v91_v29  ;;  %122 = vmatpush.msra.mxu0 %v91_v29 }
  0x33   :  { %126 = vmatmul.f32.vlgmr.msra.gmra.mxu2 %v90_v30  ;;  %123 = vmatmul.f32.vlgmr.msra.gmra.mxu0 %v89_v31 }
  0x34   :  { %235 = vmatpush.msra.mxu3 %v142_v32  ;;  %171 = vmatpush.msra.mxu1 %v142_v32 }
  0x36   :  { %236 = vmatpush.msra.mxu3 %v141_v33  ;;  %172 = vmatpush.msra.mxu1 %v141_v33 }
  0x37   :  { %176 = vmatmul.f32.vlgmr.msra.gmra.mxu3 %v140_v34  ;;  %173 = vmatmul.f32.vlgmr.msra.gmra.mxu1 %v139_v35 }
  0xb0   :  { %v124_v37 = vpop.f32.mrf.mxu0 }
  0xb1   :  { %v133_v38 = vadd.f32 %v244_v36, %v124_v37 }
  0xb4   :  { %v174_v39 = vpop.f32.mrf.mxu1 }
  0xb5   :  { %v180_v40 = vadd.f32 %v174_v39, %v133_v38 }
  0xb6   :  { %v127_v41 = vpop.f32.mrf.mxu2 }
  0xb7   :  { %v134_v42 = vadd.f32 %v244_v36, %v127_v41  ;;  %182 = vst [vmem:[#allocation10] sm:$0xff] %v180_v40 }
  0xba   :  { %v177_v43 = vpop.f32.mrf.mxu3 }
  0xbb   :  { %v181_v44 = vadd.f32 %v177_v43, %v134_v42 }
  0xbd   :  { %183 = vst [vmem:[#allocation10 + $0x8] sm:$0xff] %v181_v44 }
  0xbe   :  { %196 = dma.vmem_to_hbm [thread:$0]  %s189_s14, 256, %s191_s17, [#allocation4], %s374_s26, %s374_s26, %s375_s27  }
  0xbf   :  { %371 = dma.done.wait [#allocation4], 256  }
  0xc0   :  { %372 = vsyncadd [#allocation4], 4294967040 }
  0xc1   :  { %201 = vsyncpa [#allocation3], 1 }
  0xc2   :  { %202 = vsyncpa [#allocation6], 1 }
  0xc3   :  { %203 = vsyncpa [#allocation9], 1 }
  0xc4   :  { %204 = vsyncpa [#allocation4], 1 }

</bundles_post_ra>
